<compile_context>
chip_gen: v7x
topology: tpu7x:2x2x1
jax: 0.10.0
libtpu: 0.0.40
codegen_flags: <defaults>
</compile_context>

<pallas_src>
import jax
import jax.numpy as jnp
from jax.experimental import pallas as pl
from jax.experimental.pallas import tpu as pltpu


def mlp_policy_kernel(x_ref, w1_ref, b1_ref, w2_ref, b2_ref, w3_ref, b3_ref,
                      o_ref):
    # Cast the f32 obs tile to bf16 in-kernel (MXU headline rate), K = state_dim.
    x = x_ref[...].astype(w1_ref.dtype)
    # Layer 1: Linear (bf16 operands, f32 accumulation) + bias + ReLU.
    h1 = jnp.dot(x, w1_ref[...],
                 preferred_element_type=jnp.float32) + b1_ref[...]
    h1 = jnp.maximum(h1, 0.0).astype(w2_ref.dtype)
    # Layer 2: Linear + ReLU.
    h2 = jnp.dot(h1, w2_ref[...],
                 preferred_element_type=jnp.float32) + b2_ref[...]
    h2 = jnp.maximum(h2, 0.0).astype(w3_ref.dtype)
    # Output layer: Linear + Tanh, stored to unpadded act_dim columns.
    out = jnp.dot(h2, w3_ref[...],
                  preferred_element_type=jnp.float32) + b3_ref[...]
    o_ref[...] = jnp.tanh(out).astype(o_ref.dtype)


def _round_up(x, m):
    return ((x + m - 1) // m) * m


def _pad2(a, rows, cols):
    r, c = a.shape
    return jnp.pad(a, ((0, rows - r), (0, cols - c)))


def prepare_params(params, *, compute_dtype=jnp.bfloat16):
    """One-time prep: pad only the hidden dim to a multiple of 128, cast to bf16.

    Weights are stored transposed relative to torch.nn.Linear, i.e. shape
    (in_features, out_features), so the kernel computes x @ W + b directly.
    The contraction dim of W1 stays state_dim and the output dim of W3 stays
    act_dim (no wasted HBM traffic); only the hidden dim is zero-padded, which
    is exact: padded hidden columns stay 0 through bias+ReLU and contribute
    nothing through the zero-padded rows of the next weight.
    """
    w1, b1 = params["w1"], params["b1"]
    w2, b2 = params["w2"], params["b2"]
    w3, b3 = params["w3"], params["b3"]
    S, H = w1.shape
    A = w3.shape[1]
    Hp = _round_up(H, 128)
    prepped = dict(
        w1=_pad2(w1, S, Hp).astype(compute_dtype),
        b1=_pad2(b1, 1, Hp).astype(jnp.float32),
        w2=_pad2(w2, Hp, Hp).astype(compute_dtype),
        b2=_pad2(b2, 1, Hp).astype(jnp.float32),
        w3=_pad2(w3, Hp, A).astype(compute_dtype),
        b3=b3.astype(jnp.float32),
    )
    meta = dict(S=S, A=A, Hp=Hp, compute_dtype=compute_dtype)
    return prepped, meta


def _choose_block_b(B, S, Hp, A):
    """Pick the batch tile: big enough to amortize per-grid-step overhead,
    small enough that double-buffered obs/out tiles + live f32/bf16
    intermediates fit the VMEM budget, and >= 2 grid steps for B >= 512 so
    both v7x TensorCores get work."""
    if B < 512:
        return B  # single full-batch block (block_shape == array dim is legal)
    weight_bytes = (S * Hp + Hp * Hp + Hp * A) * 2 + (2 * Hp + A) * 4
    per_row = (2 * S * 4          # obs f32 tile, double-buffered
               + 3 * A * 4        # out f32 tile (x2) + pre-tanh f32
               + 2 * Hp * (4 + 2))  # h1/h2 f32 + their bf16 casts
    budget = max(4 << 20, (24 << 20) - weight_bytes)
    cap = (budget // per_row) // 256 * 256
    cap = max(256, min(cap, 2048))
    # v7x: guarantee >= 2 grid steps on the "parallel" batch axis.
    cap = min(cap, max(256, _round_up(B // 2, 256)))
    return cap


def mlp_policy_forward(obs, prepped, meta, *, block_b=None):
    """Fused 3-layer MLP policy forward on TPU via Pallas.

    obs: (B, state_dim) float. Returns (B, act_dim) float32 (tanh output).
    """
    obs = obs.astype(jnp.float32)
    B, S = obs.shape
    assert S == meta["S"], "obs feature dim does not match params"
    Hp, A = meta["Hp"], meta["A"]
    dtype = meta["compute_dtype"]
    wbytes = jnp.dtype(dtype).itemsize

    if block_b is None:
        block_b = _choose_block_b(B, S, Hp, A)
    num_tiles = pl.cdiv(B, block_b)

    # Resident (never re-fetched) weight/bias blocks: constant index_map,
    # single-buffered so they don't pay 2x VMEM.
    def resident(shape):
        return pl.BlockSpec(shape, lambda i: (0, 0),
                            pipeline_mode=pl.Buffered(1))

    # VMEM footprint estimate (double-buffered streams + resident weights +
    # live f32/bf16 intermediates). Raise the scoped limit only when needed;
    # cap at 56 MiB so we never exceed v7x's 64 MiB physical VMEM.
    est = 2 * block_b * (S + A) * 4                       # obs/out tiles (x2 buffers)
    est += (S * Hp + Hp * Hp + Hp * A) * wbytes           # single-buffered weights
    est += (2 * Hp + A) * 4                               # f32 biases
    est += block_b * (2 * Hp * (4 + wbytes) + A * 4)      # h1/h2 f32 + bf16, pre-tanh
    vmem_limit = None
    if est > (12 << 20):
        vmem_limit = min(int(est * 1.4) + (2 << 20), 56 << 20)

    out = pl.pallas_call(
        mlp_policy_kernel,
        out_shape=jax.ShapeDtypeStruct((B, A), jnp.float32),
        grid_spec=pl.GridSpec(
            grid=(num_tiles,),
            in_specs=[
                pl.BlockSpec((block_b, S), lambda i: (i, 0)),   # obs tile (f32)
                resident((S, Hp)), resident((1, Hp)),           # W1, b1
                resident((Hp, Hp)), resident((1, Hp)),          # W2, b2
                resident((Hp, A)), resident((1, A)),            # W3, b3
            ],
            out_specs=pl.BlockSpec((block_b, A), lambda i: (i, 0)),
        ),
        compiler_params=pltpu.CompilerParams(
            dimension_semantics=("parallel",),
            vmem_limit_bytes=vmem_limit),
    )(obs, prepped["w1"], prepped["b1"], prepped["w2"], prepped["b2"],
      prepped["w3"], prepped["b3"])

    return out


def init_params(key, state_dim, hidden_dim, act_dim):
    """Deterministic synthetic init (shapes match nn.Linear of MLPPolicy)."""
    ks = jax.random.split(key, 6)

    def lin(kw, kb, fan_in, fan_out):
        bound = 1.0 / jnp.sqrt(fan_in)
        w = jax.random.uniform(kw, (fan_in, fan_out), jnp.float32,
                               -bound, bound)
        b = jax.random.uniform(kb, (1, fan_out), jnp.float32, -bound, bound)
        return w, b

    w1, b1 = lin(ks[0], ks[1], state_dim, hidden_dim)
    w2, b2 = lin(ks[2], ks[3], hidden_dim, hidden_dim)
    w3, b3 = lin(ks[4], ks[5], hidden_dim, act_dim)
    return dict(w1=w1, b1=b1, w2=w2, b2=b2, w3=w3, b3=b3)


def mlp_policy_ref(obs, p):
    h1 = jnp.maximum(obs @ p["w1"] + p["b1"], 0.0)
    h2 = jnp.maximum(h1 @ p["w2"] + p["b2"], 0.0)
    return jnp.tanh(h2 @ p["w3"] + p["b3"])


# TODO(synk): max_action scaling/clamping is part of MLPPolicy.act(), not
# forward(); it is intentionally not fused here.

if __name__ == "__main__":
    # Small, deliberately ragged shapes (exercise hidden-dim padding, ragged
    # batch blocks, and the single-full-batch-block path).
    state_dim, hidden_dim, act_dim = 17, 32, 6

    key = jax.random.PRNGKey(0)
    k_obs1, k_obs2, k_par = jax.random.split(key, 3)
    params = init_params(k_par, state_dim, hidden_dim, act_dim)
    prepped, meta = prepare_params(params)

    # Case 1: tiny batch, single block equal to the full batch dim.
    batch = 5
    obs = jax.random.normal(k_obs1, (batch, state_dim), jnp.float32)
    out = jax.block_until_ready(mlp_policy_forward(obs, prepped, meta))
    ref = mlp_policy_ref(obs, params)
    assert out.shape == (batch, act_dim)
    max_err = float(jnp.max(jnp.abs(out - ref)))
    assert max_err < 2e-2, f"mismatch vs reference (case 1): {max_err}"

    # Case 2: multi-step grid with a ragged final block (block_b forced small).
    batch2 = 37
    obs2 = jax.random.normal(k_obs2, (batch2, state_dim), jnp.float32)
    out2 = jax.block_until_ready(
        mlp_policy_forward(obs2, prepped, meta, block_b=16))
    ref2 = mlp_policy_ref(obs2, params)
    assert out2.shape == (batch2, act_dim)
    max_err2 = float(jnp.max(jnp.abs(out2 - ref2)))
    assert max_err2 < 2e-2, f"mismatch vs reference (case 2): {max_err2}"

    print("KERNEL_OK")
</pallas_src>

<mosaic_0001>
module attributes {stable_mosaic.version = 11 : i64} {
  func.func @mlp_policy_kernel(%arg0: i32, %arg1: memref<5x17xf32, #tpu.memory_space<vmem>>, %arg2: memref<17x128xbf16, #tpu.memory_space<vmem>>, %arg3: memref<1x128xf32, #tpu.memory_space<vmem>>, %arg4: memref<128x128xbf16, #tpu.memory_space<vmem>>, %arg5: memref<1x128xf32, #tpu.memory_space<vmem>>, %arg6: memref<128x6xbf16, #tpu.memory_space<vmem>>, %arg7: memref<1x6xf32, #tpu.memory_space<vmem>>, %arg8: memref<5x6xf32, #tpu.memory_space<vmem>>) attributes {dimension_semantics = [#tpu.dimension_semantics<parallel>], iteration_bounds = array<i64: 1>, scalar_prefetch = 0 : i64, scratch_operands = 0 : i64, tpu.core_type = #tpu.core_type<tc>, window_params = [{transform_indices = @transform_0, window_bounds = array<i64: 5, 17>}, {pipeline_mode = #tpu.pipeline_mode<synchronous>, transform_indices = @transform_1, window_bounds = array<i64: 17, 128>}, {pipeline_mode = #tpu.pipeline_mode<synchronous>, transform_indices = @transform_2, window_bounds = array<i64: 1, 128>}, {pipeline_mode = #tpu.pipeline_mode<synchronous>, transform_indices = @transform_3, window_bounds = array<i64: 128, 128>}, {pipeline_mode = #tpu.pipeline_mode<synchronous>, transform_indices = @transform_4, window_bounds = array<i64: 1, 128>}, {pipeline_mode = #tpu.pipeline_mode<synchronous>, transform_indices = @transform_5, window_bounds = array<i64: 128, 6>}, {pipeline_mode = #tpu.pipeline_mode<synchronous>, transform_indices = @transform_6, window_bounds = array<i64: 1, 6>}, {transform_indices = @transform_7, window_bounds = array<i64: 5, 6>}]} {
    %c0 = arith.constant 0 : index
    %c0_0 = arith.constant 0 : index
    %0 = vector.load %arg1[%c0, %c0_0] : memref<5x17xf32, #tpu.memory_space<vmem>>, vector<5x17xf32>
    %1 = arith.truncf %0 : vector<5x17xf32> to vector<5x17xbf16>
    %c0_1 = arith.constant 0 : index
    %c0_2 = arith.constant 0 : index
    %2 = vector.load %arg2[%c0_1, %c0_2] : memref<17x128xbf16, #tpu.memory_space<vmem>>, vector<17x128xbf16>
    %cst = arith.constant dense<0.000000e+00> : vector<5x128xf32>
    %3 = tpu.matmul %1, %2, %cst {dimension_numbers = #tpu.dot_dimension_numbers<[1], [0], [0], [1], [0, 0, 1, 1], [], []>} : vector<5x17xbf16>, vector<17x128xbf16>, vector<5x128xf32> -> vector<5x128xf32>
    %c0_3 = arith.constant 0 : index
    %c0_4 = arith.constant 0 : index
    %4 = vector.load %arg3[%c0_3, %c0_4] : memref<1x128xf32, #tpu.memory_space<vmem>>, vector<1x128xf32>
    %5 = vector.broadcast %4 : vector<1x128xf32> to vector<5x128xf32>
    %6 = arith.addf %3, %5 : vector<5x128xf32>
    %cst_5 = arith.constant 0.000000e+00 : f32
    %7 = vector.broadcast %cst_5 : f32 to vector<5x128xf32>
    %8 = arith.maximumf %6, %7 : vector<5x128xf32>
    %9 = arith.truncf %8 : vector<5x128xf32> to vector<5x128xbf16>
    %c0_6 = arith.constant 0 : index
    %c0_7 = arith.constant 0 : index
    %10 = vector.load %arg4[%c0_6, %c0_7] : memref<128x128xbf16, #tpu.memory_space<vmem>>, vector<128x128xbf16>
    %cst_8 = arith.constant dense<0.000000e+00> : vector<5x128xf32>
    %11 = tpu.matmul %9, %10, %cst_8 {dimension_numbers = #tpu.dot_dimension_numbers<[1], [0], [0], [1], [0, 0, 1, 1], [], []>} : vector<5x128xbf16>, vector<128x128xbf16>, vector<5x128xf32> -> vector<5x128xf32>
    %c0_9 = arith.constant 0 : index
    %c0_10 = arith.constant 0 : index
    %12 = vector.load %arg5[%c0_9, %c0_10] : memref<1x128xf32, #tpu.memory_space<vmem>>, vector<1x128xf32>
    %13 = vector.broadcast %12 : vector<1x128xf32> to vector<5x128xf32>
    %14 = arith.addf %11, %13 : vector<5x128xf32>
    %cst_11 = arith.constant 0.000000e+00 : f32
    %15 = vector.broadcast %cst_11 : f32 to vector<5x128xf32>
    %16 = arith.maximumf %14, %15 : vector<5x128xf32>
    %17 = arith.truncf %16 : vector<5x128xf32> to vector<5x128xbf16>
    %c0_12 = arith.constant 0 : index
    %c0_13 = arith.constant 0 : index
    %18 = vector.load %arg6[%c0_12, %c0_13] : memref<128x6xbf16, #tpu.memory_space<vmem>>, vector<128x6xbf16>
    %cst_14 = arith.constant dense<0.000000e+00> : vector<5x6xf32>
    %19 = tpu.matmul %17, %18, %cst_14 {dimension_numbers = #tpu.dot_dimension_numbers<[1], [0], [0], [1], [0, 0, 1, 1], [], []>} : vector<5x128xbf16>, vector<128x6xbf16>, vector<5x6xf32> -> vector<5x6xf32>
    %c0_15 = arith.constant 0 : index
    %c0_16 = arith.constant 0 : index
    %20 = vector.load %arg7[%c0_15, %c0_16] : memref<1x6xf32, #tpu.memory_space<vmem>>, vector<1x6xf32>
    %21 = vector.broadcast %20 : vector<1x6xf32> to vector<5x6xf32>
    %22 = arith.addf %19, %21 : vector<5x6xf32>
    %23 = math.tanh %22 : vector<5x6xf32>
    %c0_17 = arith.constant 0 : index
    %c0_18 = arith.constant 0 : index
    %24 = vector.load %arg8[%c0_17, %c0_18] : memref<5x6xf32, #tpu.memory_space<vmem>>, vector<5x6xf32>
    tpu.vector_store %arg8[%c0_17, %c0_18], %23 {strides = array<i32>} : memref<5x6xf32, #tpu.memory_space<vmem>>, vector<5x6xf32>,
    return
  }
  func.func @transform_0(%arg0: i32) -> (i32, i32) {
    %c0_i32 = arith.constant 0 : i32
    %c0_i32_0 = arith.constant 0 : i32
    return %arg0, %c0_i32 : i32, i32
  }
  func.func @transform_1(%arg0: i32) -> (i32, i32) {
    %c0_i32 = arith.constant 0 : i32
    %c0_i32_0 = arith.constant 0 : i32
    %c0_i32_1 = arith.constant 0 : i32
    return %c0_i32, %c0_i32_0 : i32, i32
  }
  func.func @transform_2(%arg0: i32) -> (i32, i32) {
    %c0_i32 = arith.constant 0 : i32
    %c0_i32_0 = arith.constant 0 : i32
    %c0_i32_1 = arith.constant 0 : i32
    return %c0_i32, %c0_i32_0 : i32, i32
  }
  func.func @transform_3(%arg0: i32) -> (i32, i32) {
    %c0_i32 = arith.constant 0 : i32
    %c0_i32_0 = arith.constant 0 : i32
    %c0_i32_1 = arith.constant 0 : i32
    return %c0_i32, %c0_i32_0 : i32, i32
  }
  func.func @transform_4(%arg0: i32) -> (i32, i32) {
    %c0_i32 = arith.constant 0 : i32
    %c0_i32_0 = arith.constant 0 : i32
    %c0_i32_1 = arith.constant 0 : i32
    return %c0_i32, %c0_i32_0 : i32, i32
  }
  func.func @transform_5(%arg0: i32) -> (i32, i32) {
    %c0_i32 = arith.constant 0 : i32
    %c0_i32_0 = arith.constant 0 : i32
    %c0_i32_1 = arith.constant 0 : i32
    return %c0_i32, %c0_i32_0 : i32, i32
  }
  func.func @transform_6(%arg0: i32) -> (i32, i32) {
    %c0_i32 = arith.constant 0 : i32
    %c0_i32_0 = arith.constant 0 : i32
    %c0_i32_1 = arith.constant 0 : i32
    return %c0_i32, %c0_i32_0 : i32, i32
  }
  func.func @transform_7(%arg0: i32) -> (i32, i32) {
    %c0_i32 = arith.constant 0 : i32
    %c0_i32_0 = arith.constant 0 : i32
    return %arg0, %c0_i32 : i32, i32
  }
}

</mosaic_0001>

<bundles_post_ra>
// kernel: tpu_custom_call.1
= control target key start
LH: loop header
LB: loop body
LE: loop exit
PB: predicated region body
PF: predicated region fallthrough
CT: control target
= control target key end

     0   :  { %12 = vsyncpa [#allocation3], 0  ;;  %s675_s0 = inlined_call_operand.hbm [shape: f32[5,17], index: 0, kind: input, shape index: {}]   ;;  %s676_s1 = inlined_call_operand.vmem [shape: bf16[17,128], index: 1, kind: input, shape index: {}]   ;;  %s677_s2 = inlined_call_operand.vmem [shape: f32[1,128], index: 2, kind: input, shape index: {}]   ;;  %s678_s3 = inlined_call_operand.vmem [shape: bf16[128,128], index: 3, kind: input, shape index: {}]   ;;  %s679_s4 = inlined_call_operand.vmem [shape: f32[1,128], index: 4, kind: input, shape index: {}]   ;;  %s680_s5 = inlined_call_operand.vmem [shape: bf16[128,6], index: 5, kind: input, shape index: {}]   ;;  %s681_s6 = inlined_call_operand.vmem [shape: f32[1,6], index: 6, kind: input, shape index: {}]   ;;  %s682_s7 = inlined_call_operand.hbm [shape: f32[5,6], index: 7, kind: output, shape index: {}]  }
   0x1   :  { %13 = vsyncpa [#allocation4], 0  ;;  %s519_s24 = smov [#allocation2]   ;;  %s471_s28 = scalar_lea.hbm %s675_s0, 128 }
   0x2   :  { %s20_s25 = sshll.u32 %s519_s24, 4  ;;  %p472_p0 = scmp.ne.s32.totalorder %s675_s0, %s471_s28  ;;  %s21_s25 = int_to_ptr.vmem [resolvable:$true] %s20_s25 }
   0x3   :  { %p475_p1 = scmp.lt.u32.totalorder %s471_s28, %s675_s0 }
   0x5   :  { %p477_p2 = pnand %p475_p1, %p472_p0 }
   0x7   :  { %480 = shalt.err (!%p477_p2)
}
   0x8   :  { %s481_s10 = scalar_lea.vmem %s21_s25, 128  ;;  %p486_p4 = scmp.lt.s32.totalorder %s21_s25, %s21_s25 }
   0x9   :  { %p482_p3 = scmp.ne.s32.totalorder %s21_s25, %s481_s10  ;;  %p487_p5 = scmp.lt.s32.totalorder %s481_s10, %s481_s10 }
   0xb   :  { %p488_p6 = por %p487_p5, %p486_p4 }
   0xd   :  { %p489_p7 = pnand %p488_p6, %p482_p3 }
   0xf   :  { %492 = shalt.err (!%p489_p7)
}
  0x10   :  { %23 = dma.hbm_to_vmem [thread:$0]  %s675_s0, 128, %s21_s25, [#allocation3]  }
  0x11   :  { %515 = dma.done.wait [#allocation3], 128  }
  0x12   :  { %516 = vsyncadd [#allocation3], 4294967168  ;;  %v520_v0 = vmov 0.0   ;;  %vm521_vm0 = vmmov 0   ;;  %vm65_vm1 = vcmask 1040384   ;;  %v451_v1 = vld [vmem:[%s676_s1] sm:$0xff]  }
  0x13   :  { %398 = vmatprep.subr.bf16.mxu0 %v520_v0  ;;  %402 = vmatprep.mubr.msk.bf16.mxu0 %vm521_vm0, %v520_v0  ;;  %v522_v2 = vmov 0   ;;  %v452_v4 = vld [vmem:[%s676_s1 + $0x8] ss:$0 sps:$4 sm:$0x11]   ;;  %v453_v5 = vld [vmem:[%s678_s3] sm:$0xff]   ;;  %vm61_vm2 = vcmask 138240  }
  0x14   :  { %406 = vmatprep.subr.bf16.mxu1 %v520_v0  ;;  %422 = vmatprep.mubr.msk.bf16.mxu1 %vm521_vm0, %v520_v0  ;;  %v67_v3 = vsel %vm65_vm1, 65535, %v522_v2  ;;  %v40_v6 = vld [vmem:[#allocation2] sm:$0x1f]  ;;  %v454_v8 = vld [vmem:[%s678_s3 + $0x8] sm:$0xff]   ;;  %v455_v10 = vld [vmem:[%s678_s3 + $0x10] sm:$0xff]   ;;  %vm338_vm3 = vcmask 45056  }
  0x15   :  { %399 = vmatpush3.bf16.msra.mxu0 %v451_v1  ;;  %v69_v7 = vand.u32 %v452_v4, %v67_v3  ;;  %407 = vmatpush3.bf16.msra.mxu1 %v453_v5  ;;  %v41_v9 = vpack.c.bf16 %v40_v6, %v40_v6  ;;  %v456_v11 = vld [vmem:[%s678_s3 + $0x18] sm:$0xff]   ;;  %v457_v12 = vld [vmem:[%s678_s3 + $0x20] sm:$0xff]   ;;  %v458_v13 = vld [vmem:[%s678_s3 + $0x28] sm:$0xff]  }
  0x16   :  { %400 = vmatprep.subr.bf16.mxu0 %v520_v0  ;;  %408 = vmatprep.subr.bf16.mxu1 %v520_v0  ;;  %v459_v14 = vld [vmem:[%s678_s3 + $0x30] sm:$0xff]   ;;  %v460_v15 = vld [vmem:[%s678_s3 + $0x38] sm:$0xff]   ;;  %v461_v16 = vld [vmem:[%s680_s5] sm:$0xff]  }
  0x17   :  { %v462_v17 = vld [vmem:[%s680_s5 + $0x8] sm:$0xff]   ;;  %v463_v18 = vld [vmem:[%s680_s5 + $0x10] sm:$0xff]   ;;  %v464_v19 = vld [vmem:[%s680_s5 + $0x18] sm:$0xff]  }
  0x18   :  { %v465_v20 = vld [vmem:[%s680_s5 + $0x20] sm:$0xff]   ;;  %v466_v21 = vld [vmem:[%s680_s5 + $0x28] sm:$0xff]   ;;  %v467_v30 = vld [vmem:[%s680_s5 + $0x30] sm:$0xff]  }
  0x19   :  { %401 = vmatpush3.bf16.msra.mxu0 %v69_v7  ;;  %409 = vmatpush3.bf16.msra.mxu1 %v454_v8  ;;  %v355_v22 = vld [vmem:[%s677_s2] ss:$0 sm:$0xff]  ;;  %v468_v31 = vld [vmem:[%s680_s5 + $0x38] sm:$0xff]   ;;  %s523_s5 = smov [#allocation5]  }
  0x1a   :  { %426 = vmatprep.subr.bf16.mxu0 %v520_v0  ;;  %410 = vmatprep.subr.bf16.mxu1 %v520_v0  ;;  %v359_v32 = vld [vmem:[%s679_s4] ss:$0 sm:$0xff]  ;;  %s346_s4 = sshll.u32 %s523_s5, 4  ;;  %s347_s4 = int_to_ptr.vmem [resolvable:$true] %s346_s4 }
  0x1b   :  { %v368_v40 = vld [vmem:[%s681_s6] ss:$0 sm:$0xff]  ;;  %s493_s26 = scalar_lea.vmem %s347_s4, 128  ;;  %p498_p9 = scmp.lt.s32.totalorder %s347_s4, %s347_s4 }
  0x1c   :  { %403 = vmatmul.mubr.msk.bf16.vlgmr.msra.gmra.mrb[0].mxu0 %vm61_vm2, %v41_v9  ;;  %p494_p8 = scmp.ne.s32.totalorder %s347_s4, %s493_s26  ;;  %p499_p10 = scmp.lt.s32.totalorder %s493_s26, %s493_s26 }
  0x1d   :  { %442 = vmatprep.mubr.msk.bf16.mxu0 %vm521_vm0, %v520_v0  ;;  %411 = vmatpush3.bf16.msra.mxu1 %v455_v10 }
  0x1e   :  { %412 = vmatprep.subr.bf16.mxu1 %v520_v0  ;;  %427 = vmatpush3.bf16.msra.mxu0 %v461_v16  ;;  %p500_p11 = por %p499_p10, %p498_p9 }
  0x1f   :  { %428 = vmatprep.subr.bf16.mxu0 %v520_v0 }
  0x20   :  { %p501_p12 = pnand %p500_p11, %p494_p8 }
  0x21   :  { %413 = vmatpush3.bf16.msra.mxu1 %v456_v11 }
  0x22   :  { %414 = vmatprep.subr.bf16.mxu1 %v520_v0  ;;  %429 = vmatpush3.bf16.msra.mxu0 %v462_v17 }
  0x23   :  { %430 = vmatprep.subr.bf16.mxu0 %v520_v0 }
  0x25   :  { %415 = vmatpush3.bf16.msra.mxu1 %v457_v12 }
  0x26   :  { %416 = vmatprep.subr.bf16.mxu1 %v520_v0  ;;  %431 = vmatpush3.bf16.msra.mxu0 %v463_v18 }
  0x27   :  { %432 = vmatprep.subr.bf16.mxu0 %v520_v0 }
  0x29   :  { %417 = vmatpush3.bf16.msra.mxu1 %v458_v13 }
  0x2a   :  { %418 = vmatprep.subr.bf16.mxu1 %v520_v0  ;;  %433 = vmatpush3.bf16.msra.mxu0 %v464_v19 }
  0x2b   :  { %434 = vmatprep.subr.bf16.mxu0 %v520_v0 }
  0x2d   :  { %419 = vmatpush3.bf16.msra.mxu1 %v459_v14 }
  0x2e   :  { %420 = vmatprep.subr.bf16.mxu1 %v520_v0  ;;  %435 = vmatpush3.bf16.msra.mxu0 %v465_v20 }
  0x2f   :  { %436 = vmatprep.subr.bf16.mxu0 %v520_v0 }
  0x31   :  { %421 = vmatpush3.bf16.msra.mxu1 %v460_v15 }
  0x32   :  { %437 = vmatpush3.bf16.msra.mxu0 %v466_v21 }
  0x33   :  { %438 = vmatprep.subr.bf16.mxu0 %v520_v0 }
  0x36   :  { %439 = vmatpush3.bf16.msra.mxu0 %v467_v30 }
  0x37   :  { %440 = vmatprep.subr.bf16.mxu0 %v520_v0 }
  0x3a   :  { %441 = vmatpush3.bf16.msra.mxu0 %v468_v31 }
  0xef   :  { %v105_v23 = vpop.f32.mrb[0].mxu0 }
  0xf0   :  { %v106_v24 = vadd.f32 %v355_v22, %v105_v23  ;;  %v404_v25 = vpop.f32.mrb[1].mxu0 }
  0xf1   :  { %v108_v26 = vpop.f32.mrb[2].mxu0 }
  0xf2   :  { %v111_v27 = vmax.f32 %v106_v24, 0.0  ;;  %v405_v28 = vpop.f32.mrb[3].mxu0 }
  0xf4   :  { %v112_v29 = vpack.c.bf16 %v111_v27, %v111_v27 }
  0xf6   :  { %423 = vmatmul.mubr.bf16.vlgmr.msra.gmra.mrb[0].mxu1 %v112_v29 }
 0x1c9   :  { %v218_v33 = vpop.f32.mrb[0].mxu1 }
 0x1ca   :  { %v219_v34 = vadd.f32 %v359_v32, %v218_v33  ;;  %v424_v35 = vpop.f32.mrb[1].mxu1 }
 0x1cb   :  { %v221_v36 = vpop.f32.mrb[2].mxu1 }
 0x1cc   :  { %v224_v37 = vmax.f32 %v219_v34, 0.0  ;;  %v425_v38 = vpop.f32.mrb[3].mxu1 }
 0x1ce   :  { %v225_v39 = vpack.c.bf16 %v224_v37, %v224_v37 }
 0x1d0   :  { %443 = vmatmul.mubr.bf16.vlgmr.msra.gmra.mrb[4].mxu0 %v225_v39 }
 0x2a3   :  { %v331_v41 = vpop.f32.mrb[4].mxu0 }
 0x2a4   :  { %v332_v42 = vadd.f32 %v368_v40, %v331_v41  ;;  %v444_v43 = vpop.f32.mrb[5].mxu0 }
 0x2a5   :  { %v334_v44 = vpop.f32.mrb[6].mxu0 }
 0x2a6   :  { %469 = vtanh.f32 %v332_v42  ;;  %v445_v45 = vpop.f32.mrb[7].mxu0 }
 0x2b0   :  { %v470_v46 = vpop.eup %469 }
 0x2b1   :  { %339 = vst.msk [vmem:[#allocation5] sm:$0x1f] %vm338_vm3, %v470_v46 }
 0x2b2   :  { %504 = shalt.err (!%p501_p12)
}
 0x2b3   :  { %s505_s28 = scalar_lea.hbm %s682_s7, 128 }
 0x2b4   :  { %p506_p13 = scmp.ne.s32.totalorder %s682_s7, %s505_s28  ;;  %p509_p0 = scmp.lt.u32.totalorder %s505_s28, %s682_s7 }
 0x2b6   :  { %p511_p1 = pnand %p509_p0, %p506_p13 }
 0x2b8   :  { %514 = shalt.err (!%p511_p1)
}
 0x2b9   :  { %349 = dma.vmem_to_hbm [thread:$0]  %s347_s4, 128, %s682_s7, [#allocation4]  }
 0x2ba   :  { %517 = dma.done.wait [#allocation4], 128  }
 0x2bb   :  { %518 = vsyncadd [#allocation4], 4294967168 }
 0x2bc   :  { %353 = vsyncpa [#allocation3], 1 }
 0x2bd   :  { %354 = vsyncpa [#allocation4], 1 }

</bundles_post_ra>
